<compile_context>
chip_gen: v7x
topology: tpu7x:2x2x1
jax: 0.10.0
libtpu: 0.0.40
codegen_flags: <defaults>
</compile_context>

<pallas_src>
import functools

import jax
import jax.numpy as jnp
from jax import lax
from jax.experimental import pallas as pl
from jax.experimental.pallas import tpu as pltpu

_VMEM_TILE_BUDGET = 32 * 1024 * 1024   # target working-set per grid step
_VMEM_LIMIT_BYTES = 48 * 1024 * 1024   # safe on v5e/v6e (128 MiB) and v7x (64 MiB)


def _qnet_slab(xT_ref, w1_ref, b1_ref, w2_ref, b2_ref, wh_ref, bh_ref,
               compute_dtype):
    """Shared body: x^T tile [S, TB] -> slab [1+NA, TB].

    Row 0 = per-column sum(A), rows 1..NA = V + A (head weights/biases were
    pre-combined in the wrapper). MXU accumulates in f32; bias/ReLU in f32.
    """
    xT = xT_ref[...]                                                    # [S,  TB]
    h1 = jnp.dot(w1_ref[...], xT, preferred_element_type=jnp.float32)   # [32, TB]
    h1 = jnp.maximum(h1 + b1_ref[...], 0.0).astype(compute_dtype)
    h2 = jnp.dot(w2_ref[...], h1, preferred_element_type=jnp.float32)   # [32, TB]
    h2 = jnp.maximum(h2 + b2_ref[...], 0.0).astype(compute_dtype)
    va = jnp.dot(wh_ref[...], h2, preferred_element_type=jnp.float32)   # [1+NA, TB]
    return va + bh_ref[...]


def qnet_kernel_tiles(xT_ref, w1_ref, b1_ref, w2_ref, b2_ref, wh_ref, bh_ref,
                      out_ref, *, compute_dtype):
    """Multi-tile path: emit merged slab; wrapper finishes the global mean(A)."""
    slab = _qnet_slab(xT_ref, w1_ref, b1_ref, w2_ref, b2_ref, wh_ref, bh_ref,
                      compute_dtype)
    out_ref[...] = slab.astype(out_ref.dtype)                           # one store


def qnet_kernel_fused_mean(xT_ref, w1_ref, b1_ref, w2_ref, b2_ref, wh_ref,
                           bh_ref, qT_ref, *, compute_dtype, valid_b,
                           num_actions):
    """Single-tile fast path: compute batch-global mean(A) in-kernel (masking
    padded lanes) and emit Q directly — no second output, no wrapper reduce."""
    slab = _qnet_slab(xT_ref, w1_ref, b1_ref, w2_ref, b2_ref, wh_ref, bh_ref,
                      compute_dtype)
    colsum_a = slab[:1, :]                                              # [1, TB]
    lane = lax.broadcasted_iota(jnp.int32, colsum_a.shape, 1)
    masked = jnp.where(lane < valid_b, colsum_a, 0.0)
    mean_a = jnp.sum(masked) / jnp.float32(valid_b * num_actions)
    qT_ref[...] = (slab[1:, :] - mean_a).astype(qT_ref.dtype)           # [NA, TB]


def _round_up(n, m):
    return pl.cdiv(n, m) * m


def qnet_forward(x, params, *, block_b=32768, compute_dtype=jnp.bfloat16,
                 x_is_transposed=False, input_buffers=2,
                 megacore_split_min_batch=4096):
    """QNet forward.

    x: [B, num_states] f32 (or [num_states, B] if x_is_transposed=True).
    params: torch-layout weights ([out, in]) and biases.
    Returns Q: [B, num_actions] f32, matching QNet.forward.

    compute_dtype=bf16 by default (MXU operands); pass jnp.float32 for exact
    f32 parity. input_buffers>2 enables deeper input pipelining if profiling
    shows exposed DMA at step boundaries.
    """
    if x_is_transposed:
        S, B = x.shape
    else:
        B, S = x.shape
    H = params["w1"].shape[0]
    NA = params["wa"].shape[0]

    # ---- tile sizing -------------------------------------------------------
    in_bytes = jnp.dtype(compute_dtype).itemsize
    # Conservative VMEM bytes per lane: double-buffered x^T and output slab,
    # f32 intermediates h1/h2/va plus their compute_dtype casts.
    per_lane = (2 * S * in_bytes + 2 * (1 + NA) * 4
                + 2 * H * 4 + 2 * H * in_bytes + (1 + NA) * 4)
    tb_cap = max(128, (_VMEM_TILE_BUDGET // per_lane) // 128 * 128)

    Bp_min = _round_up(B, 128)
    tb = min(_round_up(block_b, 128), tb_cap)
    if Bp_min <= tb:
        if B >= megacore_split_min_batch:
            # Enough work to shard one tile across v7x's two TensorCores.
            tb = _round_up(pl.cdiv(Bp_min, 2), 128)
        else:
            tb = Bp_min           # single tile -> in-kernel mean fast path
    Bp = _round_up(B, tb)
    n_tiles = Bp // tb
    single_tile = (n_tiles == 1)

    # ---- operand prep (wrapper-side layout plumbing) -----------------------
    # NOTE: keep x in [S, B] layout at the call site (x_is_transposed=True) to
    # avoid this transpose; the cast+pad below fuses into a single copy.
    xT = x if x_is_transposed else x.T
    xT = jnp.pad(xT.astype(compute_dtype), ((0, 0), (0, Bp - B)))        # [S, Bp]

    w1 = params["w1"].astype(compute_dtype)                              # [H, S]
    w2 = params["w2"].astype(compute_dtype)                              # [H, H]
    b1 = params["b1"].reshape(H, 1).astype(jnp.float32)
    b2 = params["b2"].reshape(H, 1).astype(jnp.float32)
    # Augmented head: row 0 -> per-column sum(A); rows 1..NA -> V + A.
    wv, wa = params["wv"], params["wa"]
    bv, ba = params["bv"], params["ba"]
    wh = jnp.concatenate([jnp.sum(wa, axis=0, keepdims=True), wv + wa],
                         axis=0).astype(compute_dtype)                   # [1+NA, H]
    bh = jnp.concatenate([jnp.sum(ba, keepdims=True), bv + ba],
                         axis=0).reshape(1 + NA, 1).astype(jnp.float32)  # [1+NA, 1]

    const = lambda i: (0, 0)   # weights/biases stay VMEM-resident across the grid
    x_spec_kwargs = {}
    if input_buffers != 2:
        x_spec_kwargs["pipeline_mode"] = pl.Buffered(input_buffers)
    in_specs = [
        pl.BlockSpec((S, tb), lambda i: (0, i), **x_spec_kwargs),        # x^T tile
        pl.BlockSpec((H, S), const),                                     # w1
        pl.BlockSpec((H, 1), const),                                     # b1
        pl.BlockSpec((H, H), const),                                     # w2
        pl.BlockSpec((H, 1), const),                                     # b2
        pl.BlockSpec((1 + NA, H), const),                                # fused head W
        pl.BlockSpec((1 + NA, 1), const),                                # fused head b
    ]
    cparams = pltpu.CompilerParams(
        dimension_semantics=("parallel",),           # megacore split on v7x
        vmem_limit_bytes=_VMEM_LIMIT_BYTES,          # headroom beyond v5e default
    )

    if single_tile:
        qT = pl.pallas_call(
            functools.partial(qnet_kernel_fused_mean,
                              compute_dtype=compute_dtype,
                              valid_b=B, num_actions=NA),
            out_shape=jax.ShapeDtypeStruct((NA, Bp), jnp.float32),
            grid=(n_tiles,),
            in_specs=in_specs,
            out_specs=pl.BlockSpec((NA, tb), lambda i: (0, i)),
            compiler_params=cparams,
        )(xT, w1, b1, w2, b2, wh, bh)
        return qT[:, :B].T

    slab = pl.pallas_call(
        functools.partial(qnet_kernel_tiles, compute_dtype=compute_dtype),
        out_shape=jax.ShapeDtypeStruct((1 + NA, Bp), jnp.float32),
        grid=(n_tiles,),
        in_specs=in_specs,
        out_specs=pl.BlockSpec((1 + NA, tb), lambda i: (0, i)),
        compiler_params=cparams,
    )(xT, w1, b1, w2, b2, wh, bh)

    # Global mean over ALL elements of A (matches torch.mean(A)); padded columns
    # are excluded by slicing back to the real batch.
    mean_a = jnp.sum(slab[0, :B]) / jnp.float32(B * NA)
    return slab[1:, :B].T - mean_a


def init_params(key, num_states, num_actions, hidden=32):
    """Torch-layout params: weights [out, in] ~ N(0, 0.5) (module's explicit
    init); biases ~ U(-1/sqrt(fan_in), 1/sqrt(fan_in)) (PyTorch Linear default)."""
    ks = jax.random.split(key, 8)

    def w(k, fan_out, fan_in):
        return 0.5 * jax.random.normal(k, (fan_out, fan_in), jnp.float32)

    def b(k, fan_in, fan_out):
        bound = 1.0 / jnp.sqrt(jnp.float32(fan_in))
        return jax.random.uniform(k, (fan_out,), jnp.float32, -bound, bound)

    return {
        "w1": w(ks[0], hidden, num_states), "b1": b(ks[1], num_states, hidden),
        "w2": w(ks[2], hidden, hidden),     "b2": b(ks[3], hidden, hidden),
        "wv": w(ks[4], 1, hidden),          "bv": b(ks[5], hidden, 1),
        "wa": w(ks[6], num_actions, hidden), "ba": b(ks[7], hidden, num_actions),
    }


def qnet_reference(x, p):
    h1 = jnp.maximum(x @ p["w1"].T + p["b1"], 0.0)
    h2 = jnp.maximum(h1 @ p["w2"].T + p["b2"], 0.0)
    v = h2 @ p["wv"].T + p["bv"]
    a = h2 @ p["wa"].T + p["ba"]
    return v + a - jnp.mean(a)


if __name__ == "__main__":
    key = jax.random.PRNGKey(0)
    k_x1, k_x2, k_x3, k_p = jax.random.split(key, 4)

    num_states, num_actions = 4, 4
    params = init_params(k_p, num_states, num_actions)

    # Case 1: multi-tile path (forced small tile), f32 compute, exact check.
    x1 = jax.random.normal(k_x1, (200, num_states), jnp.float32)
    ref1 = qnet_reference(x1, params)
    q1 = jax.block_until_ready(
        qnet_forward(x1, params, block_b=128, compute_dtype=jnp.float32))
    assert q1.shape == (200, num_actions)
    assert jnp.allclose(q1, ref1, atol=1e-4, rtol=1e-4), "case 1 mismatch"

    # Case 2: single-tile fast path (in-kernel masked mean), f32, exact check.
    q2 = jax.block_until_ready(qnet_forward(x1, params, compute_dtype=jnp.float32))
    assert q2.shape == (200, num_actions)
    assert jnp.allclose(q2, ref1, atol=1e-4, rtol=1e-4), "case 2 mismatch"

    # Case 3: batch large enough to force the 2-way megacore split (v7x), f32.
    x3 = jax.random.normal(k_x3, (4096, num_states), jnp.float32)
    q3 = jax.block_until_ready(qnet_forward(x3, params, compute_dtype=jnp.float32))
    assert q3.shape == (4096, num_actions)
    assert jnp.allclose(q3, qnet_reference(x3, params), atol=1e-4, rtol=1e-4), \
        "case 3 mismatch"

    # Case 4: default bf16 MXU operands, tiny batch. Loose tolerance is the
    # expected bf16 rounding (not a bug) vs the f32 reference.
    x4 = jax.random.normal(k_x2, (8, num_states), jnp.float32)
    q4 = jax.block_until_ready(qnet_forward(x4, params))
    assert q4.shape == (8, num_actions)
    assert jnp.allclose(q4, qnet_reference(x4, params), atol=0.5, rtol=5e-2), \
        "case 4 mismatch (bf16)"

    print("KERNEL_OK")
</pallas_src>

<mosaic_0001>
module attributes {stable_mosaic.version = 11 : i64} {
  func.func @qnet_kernel_tiles(%arg0: i32, %arg1: memref<4x128xf32, #tpu.memory_space<vmem>>, %arg2: memref<32x4xf32, #tpu.memory_space<vmem>>, %arg3: memref<32x1xf32, #tpu.memory_space<vmem>>, %arg4: memref<32x32xf32, #tpu.memory_space<vmem>>, %arg5: memref<32x1xf32, #tpu.memory_space<vmem>>, %arg6: memref<5x32xf32, #tpu.memory_space<vmem>>, %arg7: memref<5x1xf32, #tpu.memory_space<vmem>>, %arg8: memref<5x128xf32, #tpu.memory_space<vmem>>) attributes {dimension_semantics = [#tpu.dimension_semantics<parallel>], iteration_bounds = array<i64: 2>, scalar_prefetch = 0 : i64, scratch_operands = 0 : i64, tpu.core_type = #tpu.core_type<tc>, window_params = [{transform_indices = @transform_0, window_bounds = array<i64: 4, 128>}, {pipeline_mode = #tpu.pipeline_mode<synchronous>, transform_indices = @transform_1, window_bounds = array<i64: 32, 4>}, {pipeline_mode = #tpu.pipeline_mode<synchronous>, transform_indices = @transform_2, window_bounds = array<i64: 32, 1>}, {pipeline_mode = #tpu.pipeline_mode<synchronous>, transform_indices = @transform_3, window_bounds = array<i64: 32, 32>}, {pipeline_mode = #tpu.pipeline_mode<synchronous>, transform_indices = @transform_4, window_bounds = array<i64: 32, 1>}, {pipeline_mode = #tpu.pipeline_mode<synchronous>, transform_indices = @transform_5, window_bounds = array<i64: 5, 32>}, {pipeline_mode = #tpu.pipeline_mode<synchronous>, transform_indices = @transform_6, window_bounds = array<i64: 5, 1>}, {transform_indices = @transform_7, window_bounds = array<i64: 5, 128>}]} {
    %c0 = arith.constant 0 : index
    %c0_0 = arith.constant 0 : index
    %0 = vector.load %arg1[%c0, %c0_0] : memref<4x128xf32, #tpu.memory_space<vmem>>, vector<4x128xf32>
    %c0_1 = arith.constant 0 : index
    %c0_2 = arith.constant 0 : index
    %1 = vector.load %arg2[%c0_1, %c0_2] : memref<32x4xf32, #tpu.memory_space<vmem>>, vector<32x4xf32>
    %cst = arith.constant dense<0.000000e+00> : vector<32x128xf32>
    %2 = tpu.matmul %1, %0, %cst {dimension_numbers = #tpu.dot_dimension_numbers<[1], [0], [0], [1], [0, 0, 1, 1], [], []>} : vector<32x4xf32>, vector<4x128xf32>, vector<32x128xf32> -> vector<32x128xf32>
    %c0_3 = arith.constant 0 : index
    %c0_4 = arith.constant 0 : index
    %3 = vector.load %arg3[%c0_3, %c0_4] : memref<32x1xf32, #tpu.memory_space<vmem>>, vector<32x1xf32>
    %4 = vector.broadcast %3 : vector<32x1xf32> to vector<32x128xf32>
    %5 = arith.addf %2, %4 : vector<32x128xf32>
    %cst_5 = arith.constant 0.000000e+00 : f32
    %6 = vector.broadcast %cst_5 : f32 to vector<32x128xf32>
    %7 = arith.maximumf %5, %6 : vector<32x128xf32>
    %c0_6 = arith.constant 0 : index
    %c0_7 = arith.constant 0 : index
    %8 = vector.load %arg4[%c0_6, %c0_7] : memref<32x32xf32, #tpu.memory_space<vmem>>, vector<32x32xf32>
    %cst_8 = arith.constant dense<0.000000e+00> : vector<32x128xf32>
    %9 = tpu.matmul %8, %7, %cst_8 {dimension_numbers = #tpu.dot_dimension_numbers<[1], [0], [0], [1], [0, 0, 1, 1], [], []>} : vector<32x32xf32>, vector<32x128xf32>, vector<32x128xf32> -> vector<32x128xf32>
    %c0_9 = arith.constant 0 : index
    %c0_10 = arith.constant 0 : index
    %10 = vector.load %arg5[%c0_9, %c0_10] : memref<32x1xf32, #tpu.memory_space<vmem>>, vector<32x1xf32>
    %11 = vector.broadcast %10 : vector<32x1xf32> to vector<32x128xf32>
    %12 = arith.addf %9, %11 : vector<32x128xf32>
    %cst_11 = arith.constant 0.000000e+00 : f32
    %13 = vector.broadcast %cst_11 : f32 to vector<32x128xf32>
    %14 = arith.maximumf %12, %13 : vector<32x128xf32>
    %c0_12 = arith.constant 0 : index
    %c0_13 = arith.constant 0 : index
    %15 = vector.load %arg6[%c0_12, %c0_13] : memref<5x32xf32, #tpu.memory_space<vmem>>, vector<5x32xf32>
    %cst_14 = arith.constant dense<0.000000e+00> : vector<5x128xf32>
    %16 = tpu.matmul %15, %14, %cst_14 {dimension_numbers = #tpu.dot_dimension_numbers<[1], [0], [0], [1], [0, 0, 1, 1], [], []>} : vector<5x32xf32>, vector<32x128xf32>, vector<5x128xf32> -> vector<5x128xf32>
    %c0_15 = arith.constant 0 : index
    %c0_16 = arith.constant 0 : index
    %17 = vector.load %arg7[%c0_15, %c0_16] : memref<5x1xf32, #tpu.memory_space<vmem>>, vector<5x1xf32>
    %18 = vector.broadcast %17 : vector<5x1xf32> to vector<5x128xf32>
    %19 = arith.addf %16, %18 : vector<5x128xf32>
    %c0_17 = arith.constant 0 : index
    %c0_18 = arith.constant 0 : index
    %20 = vector.load %arg8[%c0_17, %c0_18] : memref<5x128xf32, #tpu.memory_space<vmem>>, vector<5x128xf32>
    tpu.vector_store %arg8[%c0_17, %c0_18], %19 {strides = array<i32>} : memref<5x128xf32, #tpu.memory_space<vmem>>, vector<5x128xf32>,
    return
  }
  func.func @transform_0(%arg0: i32) -> (i32, i32) {
    %c0_i32 = arith.constant 0 : i32
    %c0_i32_0 = arith.constant 0 : i32
    return %c0_i32, %arg0 : i32, i32
  }
  func.func @transform_1(%arg0: i32) -> (i32, i32) {
    %c0_i32 = arith.constant 0 : i32
    %c0_i32_0 = arith.constant 0 : i32
    %c0_i32_1 = arith.constant 0 : i32
    return %c0_i32, %c0_i32_0 : i32, i32
  }
  func.func @transform_2(%arg0: i32) -> (i32, i32) {
    %c0_i32 = arith.constant 0 : i32
    %c0_i32_0 = arith.constant 0 : i32
    %c0_i32_1 = arith.constant 0 : i32
    return %c0_i32, %c0_i32_0 : i32, i32
  }
  func.func @transform_3(%arg0: i32) -> (i32, i32) {
    %c0_i32 = arith.constant 0 : i32
    %c0_i32_0 = arith.constant 0 : i32
    %c0_i32_1 = arith.constant 0 : i32
    return %c0_i32, %c0_i32_0 : i32, i32
  }
  func.func @transform_4(%arg0: i32) -> (i32, i32) {
    %c0_i32 = arith.constant 0 : i32
    %c0_i32_0 = arith.constant 0 : i32
    %c0_i32_1 = arith.constant 0 : i32
    return %c0_i32, %c0_i32_0 : i32, i32
  }
  func.func @transform_5(%arg0: i32) -> (i32, i32) {
    %c0_i32 = arith.constant 0 : i32
    %c0_i32_0 = arith.constant 0 : i32
    %c0_i32_1 = arith.constant 0 : i32
    return %c0_i32, %c0_i32_0 : i32, i32
  }
  func.func @transform_6(%arg0: i32) -> (i32, i32) {
    %c0_i32 = arith.constant 0 : i32
    %c0_i32_0 = arith.constant 0 : i32
    %c0_i32_1 = arith.constant 0 : i32
    return %c0_i32, %c0_i32_0 : i32, i32
  }
  func.func @transform_7(%arg0: i32) -> (i32, i32) {
    %c0_i32 = arith.constant 0 : i32
    %c0_i32_0 = arith.constant 0 : i32
    return %c0_i32, %arg0 : i32, i32
  }
}

</mosaic_0001>

<bundles_post_ra>
// kernel: tpu_custom_call.1
= control target key start
LH: loop header
LB: loop body
LE: loop exit
PB: predicated region body
PF: predicated region fallthrough
CT: control target
= control target key end

     0   :  { %12 = vsyncpa [#allocation3], 0  ;;  %s1095_s0 = inlined_call_operand.vmem [shape: f32[4,256], index: 0, kind: input, shape index: {}]   ;;  %s1096_s1 = inlined_call_operand.vmem [shape: f32[32,4], index: 1, kind: input, shape index: {}]   ;;  %s1097_s2 = inlined_call_operand.vmem [shape: f32[32,1], index: 2, kind: input, shape index: {}]   ;;  %s1098_s3 = inlined_call_operand.vmem [shape: f32[32,32], index: 3, kind: input, shape index: {}]   ;;  %s1099_s4 = inlined_call_operand.vmem [shape: f32[32,1], index: 4, kind: input, shape index: {}]   ;;  %s1100_s5 = inlined_call_operand.vmem [shape: f32[5,32], index: 5, kind: input, shape index: {}]   ;;  %s1101_s6 = inlined_call_operand.vmem [shape: f32[5,1], index: 6, kind: input, shape index: {}]   ;;  %s1102_s7 = inlined_call_operand.hbm [shape: f32[5,256], index: 7, kind: output, shape index: {}]  }
   0x1   :  { %14 = vsyncpa [#allocation3 + $0x1], 0  ;;  %s932_s24 = smov 0   ;;  %s934_s25 = smov 0  }
   0x2   :  { %s936_s26 = smov 0   ;;  %s938_s27 = smov 0  }
   0x3 LB: > { %s953_s28 = sadd.s32 4294967295, %s885_s27   ;;  %s693_s29 = sadd.s32 4294967294, %s885_s27   ;;  %s885_s27 = sphi %s938_s27, %s1108_s27   ;;  %s881_s26 = sphi %s936_s26, %s1107_s26   ;;  %s877_s25 = sphi %s934_s25, %s1106_s25   ;;  %s873_s24 = sphi %s932_s24, %s1105_s24  }
   0x4   : > { %s957_s30 = sadd.s32 1, %s885_s27   ;;  %s179_s8 = sadd.s32 1, %s881_s26 }
   0x5   : > { %s176_s9 = ssub.s32 %s885_s27, %s957_s30  ;;  %p189_p0 = scmp.ne.s32.totalorder %s881_s26, %s877_s25 }
   0x6   : > { %p177_p1 = scmp.eq.s32.totalorder %s176_s9, 0  ;;  %p190_p2 = scmp.eq.s32.totalorder %s953_s28, 1 }
   0x7   : > { %p195_p3 = scmp.ne.s32.totalorder %s877_s25, %s873_s24  ;;  %p196_p4 = scmp.eq.s32.totalorder %s693_s29, 1 }
   0x8   : > { %s968_s10 = scalar_select %p177_p1, %s881_s26, %s179_s8  }
   0x9   : > { %p970_p5 = por %p190_p2, %p189_p0  ;;  %p974_p6 = por %p196_p4, %p195_p3 }
   0xa   : > { %p696_p7 = scmp.ge.s32.totalorder %s885_s27, 1  ;;  %p239_p8 = scmp.lt.s32.totalorder %s885_s27, 3 }
   0xc   : > { %p240_p9 = pnand %p696_p7, %p239_p8 }
   0xd   : > { %p270_p10 = scmp.lt.s32.totalorder (!%p240_p9), %s953_s28, 1  ;;  %v275_v0 = vld [vmem:[%s1096_s1] sm:$0xff] (!%p240_p9)  ;;  %vm303_vm0 = vcmask (!%p240_p9), 31744   ;;  %v887_v2 = vmov (!%p240_p9), 0   ;;  %v281_v3 = vld [vmem:[%s1097_s2 + $0x10] sm:$0xff] (!%p240_p9)  ;;  %vm316_vm1 = vcmask (!%p240_p9), 1043456  }
   0xe   : > { %243 = sbr.rel (%p240_p9) target bundleno = 709 (0x2c5), region = 48  ;;  %733 = vmatprep.mubr.msk.f32.mxu0 (!%p240_p9), %vm303_vm0, %v275_v0  ;;  %v279_v1 = vld [vmem:[%s1097_s2] sm:$0xff] (!%p240_p9)  ;;  %821 = vset.pattern.permute.xlu0 (!%p240_p9), %v887_v2  ;;  %v280_v4 = vld [vmem:[%s1097_s2 + $0x8] sm:$0xff] (!%p240_p9)  ;;  %v282_v5 = vld [vmem:[%s1097_s2 + $0x18] sm:$0xff] (!%p240_p9)  ;;  %vm437_vm2 = vcmask (!%p240_p9), 261120   ;;  %v888_v37 = vmov (!%p240_p9), 0.0|0.0  }
   0xf   : > { %822 = vset.pattern.permute.xlu1 (!%p240_p9), %v887_v2  ;;  %285 = vperm.xlu0 (!%p240_p9), %821, %v279_v1   ;;  %v276_v7 = vld [vmem:[%s1096_s1 + $0x8] sm:$0xff] (!%p240_p9)  ;;  %v277_v8 = vld [vmem:[%s1096_s1 + $0x10] sm:$0xff] (!%p240_p9)  ;;  %v413_v9 = vld [vmem:[%s1099_s4] sm:$0xff] (!%p240_p9)  ;;  %vm889_vm3 = vmmov (!%p240_p9), 0   ;;  %v890_v38 = vmov (!%p240_p9), 0.0   ;;  %s267_s9 = sand.u32 (!%p240_p9), 1, %s877_s25  }
  0x10   : > { %295 = vperm.xlu1 (!%p240_p9), %822, %v281_v3   ;;  %v414_v10 = vld [vmem:[%s1099_s4 + $0x8] sm:$0xff] (!%p240_p9)  ;;  %v278_v11 = vld [vmem:[%s1096_s1 + $0x18] sm:$0xff] (!%p240_p9)  ;;  %v415_v12 = vld [vmem:[%s1099_s4 + $0x10] sm:$0xff] (!%p240_p9)  ;;  %s697_s13 = sshll.u32 (!%p240_p9), %s267_s9, 3  ;;  %s710_s14 = sshll.u32 (!%p240_p9), %s953_s28, 7 }
  0x11   : > { %v416_v13 = vld [vmem:[%s1099_s4 + $0x18] sm:$0xff] (!%p240_p9)  ;;  %v540_v14 = vld [vmem:[%s1101_s6] sm:$0x1f] (!%p240_p9)  ;;  %v410_v34 = vld [vmem:[%s1098_s3 + $0x8] sm:$0xff] (!%p240_p9)  ;;  %s269_s15 = scalar_lea.vmem (!%p240_p9), [#allocation2], %s697_s13  ;;  %s1053_s19 = scalar_lea.hbm (!%p240_p9), %s1102_s7, %s710_s14 }
  0x12   : > { %v409_v15 = vld [vmem:[%s1098_s3] sm:$0xff] (!%p240_p9)  ;;  %v411_v35 = vld [vmem:[%s1098_s3 + $0x10] sm:$0xff] (!%p240_p9)  ;;  %v412_v36 = vld [vmem:[%s1098_s3 + $0x18] sm:$0xff] (!%p240_p9)  ;;  %s634_s16 = sshll.u32 (!%p240_p9), %s269_s15, 4  ;;  %s1055_s16 = int_to_ptr.vmem [resolvable:$true] %s634_s16 }
  0x13   : > { %290 = vperm.xlu0 (!%p240_p9), %821, %v280_v4   ;;  %747 = vmatprep.mubr.msk.f32.mxu1 (!%p240_p9), %vm437_vm2, %v409_v15  ;;  %v539_v57 = vld [vmem:[%s1100_s5] sm:$0x1f] (!%p240_p9)  ;;  %s823_s21 = scalar_lea.vmem (!%p240_p9), %s1055_s16, 128 }
  0x14   : > { %300 = vperm.xlu1 (!%p240_p9), %822, %v282_v5   ;;  %p824_p11 = scmp.ne.s32.totalorder (!%p240_p9), %s1055_s16, %s823_s21 }
  0x15   : > { %s271_s17 = scalar_select %p270_p10, %s953_s28, 1 }
  0x16   : > { %p825_p12 = pnand %p824_p11, %p970_p5  ;;  %s891_s28 = smov [#allocation2]  }
  0x17   : > { %s698_s20 = sshll.u32 %s271_s17, 2  ;;  %419 = vperm.xlu0 %821, %v413_v9   ;;  %s827_s22 = sshll.u32 %s891_s28, 4  ;;  %s828_s22 = int_to_ptr.vmem [resolvable:$false] %s827_s22 }
  0x18   : > { %s273_s8 = scalar_lea.vmem %s1095_s0, %s698_s20  ;;  %424 = vperm.xlu1 %822, %v414_v10   ;;  %s621_s20 = scalar_lea.sflag [#allocation3], %s267_s9 }
  0x19   : > { %v274_v6 = vld [vmem:[%s273_s8] sm:$0xf]  ;;  %p826_p13 = pneg %p825_p12  ;;  %s829_s23 = scalar_lea.vmem %s828_s22, 256 }
  0x1a   : > { %731 = vmatprep.subr.msk.mxu0 %vm316_vm1, %v274_v6  ;;  %p830_p0 = scmp.lt.s32.totalorder %s1055_s16, %s828_s22  ;;  %p831_p1 = scmp.lt.s32.totalorder %s829_s23, %s823_s21 }
  0x1b   : > { %732 = vmatpush3.msk.msra.mxu0 %vm316_vm1, %v274_v6  ;;  %429 = vperm.xlu0 %821, %v415_v12  }
  0x1c   : > { %734 = vmatmul.mubr.msk.f32.vlgmr.msra.gmra.mrb[0].mxu0 %vm303_vm0, %v276_v7  ;;  %434 = vperm.xlu1 %822, %v416_v13   ;;  %p832_p2 = por %p831_p1, %p830_p0 }
  0x1d   : > { %736 = vmatprep.mubr.msk.f32.mxu0 %vm303_vm0, %v277_v8  ;;  %772 = vmatprep.subr.bf16.mxu0 %v888_v37 }
  0x1e   : > { %p833_p3 = pnand %p832_p2, %p826_p13 }
  0x1f   : > { %543 = vperm.xlu0 %821, %v540_v14  }
  0x20   : > { %737 = vmatmul.mubr.msk.f32.gmra.mrb[2].mxu0 %vm303_vm0, %v278_v11 }
  0x21   : > { %761 = vmatprep.mubr.msk.f32.mxu0 %vm889_vm3, %v890_v38 }
  0x8e   : > { %v286_v16 = vpop.permute.xlu0 %285 }
  0x8f   : > { %v296_v17 = vpop.permute.xlu1 %295 }
  0x92   : > { %v291_v18 = vpop.permute.xlu0 %290 }
  0x93   : > { %v301_v24 = vpop.permute.xlu1 %300 }
  0x96   : > { %v420_v40 = vpop.permute.xlu0 %419 }
  0x97   : > { %v425_v39 = vpop.permute.xlu1 %424 }
  0x9a   : > { %v430_v49 = vpop.permute.xlu0 %429 }
  0x9b   : > { %v435_v46 = vpop.permute.xlu1 %434 }
  0x9e   : > { %v544_v58 = vpop.permute.xlu0 %543 }
  0xef   : > { %v735_v19 = vpop.f32.mrb[0].mxu0 }
  0xf0   : > { %v392_v20 = vadd.f32 %v735_v19, %v291_v18  ;;  %v386_v21 = vpop.f32.mrb[1].mxu0 }
  0xf1   : > { %v387_v22 = vadd.f32 %v386_v21, %v286_v16 }
  0xf2   : > { %v406_v23 = vmax.f32 %v392_v20, 0.0 }
  0xf3   : > { %v405_v25 = vmax.f32 %v387_v22, 0.0  ;;  %v738_v26 = vpop.f32.mrb[2].mxu0 }
  0xf4   : > { %v402_v27 = vadd.f32 %v738_v26, %v301_v24  ;;  %v396_v28 = vpop.f32.mrb[3].mxu0 }
  0xf5   : > { %v397_v29 = vadd.f32 %v396_v28, %v296_v17  ;;  %v764_v30 = vpack.c.bf16 %v406_v23, %v405_v25 }
  0xf6   : > { %v408_v31 = vmax.f32 %v402_v27, 0.0 }
  0xf7   : > { %v407_v32 = vmax.f32 %v397_v29, 0.0  ;;  %765 = vmatprep.subr.bf16.mxu1 %v764_v30 }
  0xf8   : > { %767 = vmatpush3.bf16.msra.mxu1 %v764_v30 }
  0xf9   : > { %v768_v33 = vpack.c.bf16 %v408_v31, %v407_v32 }
  0xfb   : > { %769 = vmatprep.subr.bf16.mxu1 %v768_v33 }
  0xfc   : > { %771 = vmatpush3.bf16.msra.mxu1 %v768_v33 }
  0xff   : > { %748 = vmatmul.mubr.msk.f32.vlgmr.msra.gmra.mrb[0].mxu1 %vm437_vm2, %v410_v34 }
 0x100   : > { %750 = vmatprep.mubr.msk.f32.mxu1 %vm437_vm2, %v411_v35 }
 0x103   : > { %751 = vmatmul.mubr.msk.f32.gmra.mrb[2].mxu1 %vm437_vm2, %v412_v36 }
 0x1d2   : > { %v749_v41 = vpop.f32.mrb[0].mxu1 }
 0x1d3   : > { %v522_v42 = vadd.f32 %v749_v41, %v425_v39  ;;  %v516_v43 = vpop.f32.mrb[1].mxu1 }
 0x1d4   : > { %v517_v44 = vadd.f32 %v516_v43, %v420_v40 }
 0x1d5   : > { %v536_v45 = vmax.f32 %v522_v42, 0.0 }
 0x1d6   : > { %v535_v47 = vmax.f32 %v517_v44, 0.0  ;;  %v752_v48 = vpop.f32.mrb[2].mxu1 }
 0x1d7   : > { %v532_v50 = vadd.f32 %v752_v48, %v435_v46  ;;  %v526_v51 = vpop.f32.mrb[3].mxu1 }
 0x1d8   : > { %v773_v52 = vpack.c.bf16 %v536_v45, %v535_v47  ;;  %v527_v53 = vadd.f32 %v526_v51, %v430_v49 }
 0x1d9   : > { %v538_v54 = vmax.f32 %v532_v50, 0.0 }
 0x1da   : > { %v537_v55 = vmax.f32 %v527_v53, 0.0  ;;  %774 = vmatpush3.bf16.msra.mxu0 %v773_v52 }
 0x1db   : > { %775 = vmatprep.subr.bf16.mxu0 %v888_v37 }
 0x1dc   : > { %v776_v56 = vpack.c.bf16 %v538_v54, %v537_v55 }
 0x1de   : > { %777 = vmatpush3.bf16.msra.mxu0 %v776_v56 }
 0x1e1   : > { %762 = vmatmul.mubr.msk.f32.vlgmr.msra.gmra.mrb[4].mxu0 %vm437_vm2, %v539_v57 }
 0x2b4   : > { %v615_v59 = vpop.f32.mrb[4].mxu0 }
 0x2b5   : > { %v616_v60 = vadd.f32 %v615_v59, %v544_v58  ;;  %v763_v61 = vpop.f32.mrb[5].mxu0 }
 0x2b7   : > { %619 = vst [vmem:[%s269_s15] sm:$0x1f] %v616_v60 }
 0x2b8   : > { %836 = shalt.err (!%p833_p3)
}
 0x2b9   : > { %s837_s29 = scalar_lea.hbm %s1053_s19, 128  ;;  %s841_s13 = scalar_lea.hbm %s1102_s7, 256 }
 0x2ba   : > { %p838_p4 = scmp.ne.s32.totalorder %s1053_s19, %s837_s29  ;;  %p842_p9 = scmp.lt.u32.totalorder %s1053_s19, %s1102_s7 }
 0x2bb   : > { %p843_p10 = scmp.lt.u32.totalorder %s841_s13, %s837_s29  ;;  %p845_p12 = scmp.lt.u32.totalorder %s837_s29, %s1053_s19 }
 0x2bc   : > { %p839_p7 = pnand %p838_p4, %p970_p5 }
 0x2bd   : > { %p844_p11 = por %p843_p10, %p842_p9 }
 0x2be   : > { %p840_p8 = pneg %p839_p7 }
 0x2bf   : > { %p846_p13 = por %p845_p12, %p844_p11 }
 0x2c1   : > { %p847_p0 = pnand %p846_p13, %p840_p8 }
 0x2c3   : > { %850 = shalt.err (!%p847_p0)
}
 0x2c4   : > { %778 = dma.vmem_to_hbm [thread:$0]  (%p970_p5), %s1055_s16, 128, %s1053_s19, %s621_s20  }
 0x2c5 PF: > { %p784_p1 = scmp.ge.s32.totalorder %s885_s27, 2  ;;  %s646_s17 = sand.u32 1, %s873_s24  }
 0x2c6   : > { %s647_s18 = scalar_lea.sflag [#allocation3], %s646_s17 }
 0x2c7   : > { %p781_p2 = pnand %p784_p1, %p974_p6 }
 0x2c9   : > { %868 = dma.done.wait (!%p781_p2), %s647_s18, 128  }
 0x2ca   : > { %870 = vsyncadd (!%p781_p2), %s647_s18, 4294967168  ;;  %p17_p3 = scmp.ge.s32.totalorder %s957_s30, 4   ;;  %s1105_s24 = smov %s877_s25 }
 0x2cb   : > { %s1106_s25 = smov %s881_s26  ;;  %s1107_s26 = smov %s968_s10 }
 0x2cc   : > { %s1108_s27 = smov %s957_s30  ;;  %19 = sbr.rel (!%p17_p3) target bundleno = 3 (0x3), region = 83 }
 0x2d3   :  { %652 = vsyncpa [#allocation3], 1 }
 0x2d4   :  { %654 = vsyncpa [#allocation3 + $0x1], 1 }

</bundles_post_ra>
